<compile_context>
chip_gen: v5e
topology: v5e:2x2
jax: 0.10.0
libtpu: 0.0.40
codegen_flags: <defaults>
</compile_context>

<pallas_src>
import functools

import jax
import jax.numpy as jnp
from jax.experimental import pallas as pl
from jax.experimental.pallas import tpu as pltpu


# ---------------------------------------------------------------------------
# VMEM sizing helpers (generation-aware, padding-aware).
# ---------------------------------------------------------------------------

def _round_up(x, m):
    return ((x + m - 1) // m) * m


def _sublane_pack(dtype):
    # f32 -> 8, bf16 -> 16, int8/fp8 -> 32 rows per sublane tile.
    return 8 * max(1, 4 // jnp.dtype(dtype).itemsize)


def _padded_bytes(rows, cols, dtype):
    """VMEM footprint of a (rows, cols) block after sublane/lane padding."""
    dt = jnp.dtype(dtype)
    return _round_up(rows, _sublane_pack(dt)) * _round_up(cols, 128) * dt.itemsize


def _vmem_capacity_bytes():
    try:
        cap = getattr(pltpu.get_tpu_info(), "vmem_capacity_bytes", None)
        if cap:
            return int(cap)
    except Exception:
        pass
    return 64 * 1024 * 1024  # conservative fallback (v7x per-core VMEM)


# ---------------------------------------------------------------------------
# Kernels.
# ---------------------------------------------------------------------------

def _pwconv_kernel(x_ref, w_ref, b_ref, o_ref):
    # x_ref: (C_in, tT)  w_ref: (C_out, C_in)  b_ref: (C_out, 1) f32  o_ref: (C_out, tT)
    acc = jnp.dot(w_ref[...], x_ref[...], preferred_element_type=jnp.float32)
    o_ref[...] = (acc + b_ref[...]).astype(o_ref.dtype)


def _pwconv_kernel_tiled(x_ref, w_ref, b_ref, o_ref, acc_ref):
    # x_ref: (kc, tT)  w_ref: (oc, kc)  b_ref: (oc, 1) f32
    # o_ref: (oc, tT)  acc_ref: (oc, tT) f32
    k = pl.program_id(3)

    @pl.when(k == 0)
    def _():
        acc_ref[...] = jnp.zeros_like(acc_ref)

    acc_ref[...] += jnp.dot(w_ref[...], x_ref[...],
                            preferred_element_type=jnp.float32)

    @pl.when(k == pl.num_programs(3) - 1)
    def _():
        o_ref[...] = (acc_ref[...] + b_ref[...]).astype(o_ref.dtype)


# ---------------------------------------------------------------------------
# Wrapper.
# ---------------------------------------------------------------------------

@functools.partial(
    jax.jit,
    static_argnames=("t_tile", "oc_tile", "kc_tile", "force_weight_tiling"))
def pointwise_conv(x, weight, bias, *, t_tile=None, oc_tile=None, kc_tile=None,
                   force_weight_tiling=False):
    """1x1 Conv1d (PointWiseConv forward).

    x:      (B, C_in, T)       NCW, like PyTorch
    weight: (C_out, C_in, 1)   PyTorch Conv1d weight layout
    bias:   (C_out,)
    returns (B, C_out, T)
    """
    B, C_in, T = x.shape
    C_out = weight.shape[0]
    out_dtype = x.dtype

    w2d = weight[:, :, 0]                                  # (C_out, C_in)
    b2d = bias.astype(jnp.float32).reshape(C_out, 1)       # cast once, not per step

    capacity = _vmem_capacity_bytes()
    budget = (capacity * 3) // 8          # ~48 MiB on v5e/v6e, ~24 MiB on v7x
    t_cap = 2048 if capacity > 96 * 1024 * 1024 else 1024

    if t_tile is not None and not (t_tile == T or (t_tile % 128 == 0 and t_tile <= T)):
        raise ValueError("t_tile must equal T or be a multiple of 128 and <= T")

    w_resident = _padded_bytes(C_out, C_in, w2d.dtype)
    b_resident = _padded_bytes(C_out, 1, jnp.float32)
    use_tiled_weight = force_weight_tiling or (w_resident > budget // 4)

    if not use_tiled_weight:
        # ----- small/medium channels: whole weight + bias resident in VMEM -----
        resident = w_resident + b_resident
        if t_tile is not None:
            tt = t_tile
        else:
            per128 = (2 * _padded_bytes(C_in, 128, x.dtype)
                      + 2 * _padded_bytes(C_out, 128, out_dtype))
            fits_full_T = (resident
                           + 2 * _padded_bytes(C_in, T, x.dtype)
                           + 2 * _padded_bytes(C_out, T, out_dtype)) <= budget
            if T <= t_cap and fits_full_T:
                tt = T
            else:
                tt = 128 * max(1, (budget - resident) // per128)
                tt = int(min(tt, t_cap, _round_up(T, 128)))
                tt = min(tt, T)

        footprint = (resident
                     + 2 * _padded_bytes(C_in, tt, x.dtype)
                     + 2 * _padded_bytes(C_out, tt, out_dtype))
        vmem_limit = int(min(capacity,
                             max(int(footprint * 1.3) + (4 << 20), 32 << 20)))

        grid = (B, pl.cdiv(T, tt))
        return pl.pallas_call(
            _pwconv_kernel,
            out_shape=jax.ShapeDtypeStruct((B, C_out, T), out_dtype),
            grid=grid,
            in_specs=[
                # Streaming activations: one (C_in, tT) slab per grid step.
                pl.BlockSpec((None, C_in, tt), lambda b, t: (b, 0, t)),
                # Grid-invariant operands: whole array resident in VMEM (single copy).
                pl.BlockSpec(memory_space=pltpu.MemorySpace.VMEM),
                pl.BlockSpec(memory_space=pltpu.MemorySpace.VMEM),
            ],
            out_specs=pl.BlockSpec((None, C_out, tt), lambda b, t: (b, 0, t)),
            compiler_params=pltpu.CompilerParams(
                dimension_semantics=("parallel", "parallel"),
                vmem_limit_bytes=vmem_limit,
            ),
        )(x, w2d, b2d)

    # ----- large channels: stream the weight, accumulate over a C_in grid axis -----
    # kc must divide C_in exactly (or equal C_in): a ragged contraction block would
    # pull garbage lanes into the accumulation.
    if kc_tile is not None:
        kc = kc_tile
    else:
        kc = C_in
        if C_in > 512:
            for cand in (512, 384, 256, 128):
                if C_in % cand == 0:
                    kc = cand
                    break
    if not (kc == C_in or (C_in % kc == 0 and kc % 128 == 0)):
        raise ValueError("kc_tile must equal C_in or be a 128-multiple divisor of C_in")

    if oc_tile is not None:
        oc = oc_tile
    else:
        oc = C_out if C_out <= 256 else 256
    if not (oc == C_out or (oc % 8 == 0 and oc <= C_out)):
        raise ValueError("oc_tile must equal C_out or be a multiple of 8 and <= C_out")

    if t_tile is not None:
        tt = t_tile
    else:
        fixed = (2 * _padded_bytes(oc, kc, w2d.dtype)
                 + 2 * _padded_bytes(oc, 1, jnp.float32))
        per128 = (2 * _padded_bytes(kc, 128, x.dtype)
                  + 2 * _padded_bytes(oc, 128, out_dtype)
                  + _padded_bytes(oc, 128, jnp.float32))   # f32 accumulator scratch
        tt = 128 * max(1, (budget - fixed) // per128)
        tt = int(min(tt, 1024, _round_up(T, 128)))
        tt = min(tt, T)

    footprint = (2 * _padded_bytes(kc, tt, x.dtype)
                 + 2 * _padded_bytes(oc, kc, w2d.dtype)
                 + 2 * _padded_bytes(oc, 1, jnp.float32)
                 + 2 * _padded_bytes(oc, tt, out_dtype)
                 + _padded_bytes(oc, tt, jnp.float32))
    vmem_limit = int(min(capacity,
                         max(int(footprint * 1.3) + (4 << 20), 32 << 20)))

    grid = (B, pl.cdiv(C_out, oc), pl.cdiv(T, tt), C_in // kc if kc != C_in else 1)
    return pl.pallas_call(
        _pwconv_kernel_tiled,
        out_shape=jax.ShapeDtypeStruct((B, C_out, T), out_dtype),
        grid=grid,
        in_specs=[
            pl.BlockSpec((None, kc, tt), lambda b, j, t, k: (b, k, t)),
            pl.BlockSpec((oc, kc),       lambda b, j, t, k: (j, k)),
            pl.BlockSpec((oc, 1),        lambda b, j, t, k: (j, 0)),
        ],
        out_specs=pl.BlockSpec((None, oc, tt), lambda b, j, t, k: (b, j, t)),
        scratch_shapes=[pltpu.VMEM((oc, tt), jnp.float32)],
        compiler_params=pltpu.CompilerParams(
            dimension_semantics=("parallel", "parallel", "parallel", "arbitrary"),
            vmem_limit_bytes=vmem_limit,
        ),
    )(x, w2d, b2d)


if __name__ == "__main__":
    key = jax.random.PRNGKey(0)
    k_x, k_w, k_b, k_x2, k_x3, k_w3, k_b3 = jax.random.split(key, 7)

    def ref_conv(x, w, b):
        return jnp.einsum("bct,oc->bot", x, w[:, :, 0]) + b[None, :, None]

    # 1) Small shapes consistent with the module (resident-weight path).
    B, C_in, C_out, T = 2, 4, 8, 16
    x = jax.random.normal(k_x, (B, C_in, T), dtype=jnp.float32)
    weight = jax.random.normal(k_w, (C_out, C_in, 1), dtype=jnp.float32) * 0.1
    bias = jax.random.normal(k_b, (C_out,), dtype=jnp.float32) * 0.1
    out = jax.block_until_ready(pointwise_conv(x, weight, bias))
    assert out.shape == (B, C_out, T)
    assert jnp.allclose(out, ref_conv(x, weight, bias), atol=1e-4, rtol=1e-4)

    # 2) Multi-step T grid with a ragged final tile (masked writeback, no jnp.pad).
    B2, C2_in, C2_out, T2 = 1, 8, 16, 600
    x2 = jax.random.normal(k_x2, (B2, C2_in, T2), dtype=jnp.float32)
    w2 = jax.random.normal(k_w, (C2_out, C2_in, 1), dtype=jnp.float32) * 0.1
    b2 = jax.random.normal(k_b, (C2_out,), dtype=jnp.float32) * 0.1
    out2 = jax.block_until_ready(pointwise_conv(x2, w2, b2, t_tile=256))
    assert out2.shape == (B2, C2_out, T2)
    assert jnp.allclose(out2, ref_conv(x2, w2, b2), atol=1e-4, rtol=1e-4)

    # 3) Force the weight-tiled path (C_out tiles + accumulated C_in grid axis) at
    #    small shapes: 2 K steps, 3 C_out tiles (ragged), 3 T tiles (ragged).
    B3, C3_in, C3_out, T3 = 1, 256, 40, 300
    x3 = jax.random.normal(k_x3, (B3, C3_in, T3), dtype=jnp.float32)
    w3 = jax.random.normal(k_w3, (C3_out, C3_in, 1), dtype=jnp.float32) * 0.05
    b3 = jax.random.normal(k_b3, (C3_out,), dtype=jnp.float32) * 0.1
    out3 = jax.block_until_ready(
        pointwise_conv(x3, w3, b3, force_weight_tiling=True,
                       oc_tile=16, kc_tile=128, t_tile=128))
    assert out3.shape == (B3, C3_out, T3)
    assert jnp.allclose(out3, ref_conv(x3, w3, b3), atol=1e-3, rtol=1e-3)

    print("KERNEL_OK")
</pallas_src>

<mosaic_0001>
module attributes {stable_mosaic.version = 11 : i64} {
  func.func @_pwconv_kernel(%arg0: i32, %arg1: i32, %arg2: memref<1x4x16xf32, #tpu.memory_space<vmem>>, %arg3: memref<8x4xf32, #tpu.memory_space<vmem>>, %arg4: memref<8x1xf32, #tpu.memory_space<vmem>>, %arg5: memref<1x8x16xf32, #tpu.memory_space<vmem>>) attributes {dimension_semantics = [#tpu.dimension_semantics<parallel>, #tpu.dimension_semantics<parallel>], iteration_bounds = array<i64: 2, 1>, scalar_prefetch = 0 : i64, scratch_operands = 0 : i64, tpu.core_type = #tpu.core_type<tc>, window_params = [{transform_indices = @transform_0, window_bounds = array<i64: 1, 4, 16>}, {pipeline_mode = #tpu.pipeline_mode<synchronous>, transform_indices = @transform_1, window_bounds = array<i64: 8, 4>}, {pipeline_mode = #tpu.pipeline_mode<synchronous>, transform_indices = @transform_2, window_bounds = array<i64: 8, 1>}, {transform_indices = @transform_3, window_bounds = array<i64: 1, 8, 16>}]} {
    %c0 = arith.constant 0 : index
    %c0_0 = arith.constant 0 : index
    %0 = vector.load %arg3[%c0, %c0_0] : memref<8x4xf32, #tpu.memory_space<vmem>>, vector<8x4xf32>
    %c0_1 = arith.constant 0 : index
    %c0_2 = arith.constant 0 : index
    %c0_3 = arith.constant 0 : index
    %1 = vector.load %arg2[%c0_1, %c0_2, %c0_3] : memref<1x4x16xf32, #tpu.memory_space<vmem>>, vector<1x4x16xf32>
    %2 = vector.shape_cast %1 : vector<1x4x16xf32> to vector<4x16xf32>
    %cst = arith.constant dense<0.000000e+00> : vector<8x16xf32>
    %3 = tpu.matmul %0, %2, %cst {dimension_numbers = #tpu.dot_dimension_numbers<[1], [0], [0], [1], [0, 0, 1, 1], [], []>} : vector<8x4xf32>, vector<4x16xf32>, vector<8x16xf32> -> vector<8x16xf32>
    %c0_4 = arith.constant 0 : index
    %c0_5 = arith.constant 0 : index
    %4 = vector.load %arg4[%c0_4, %c0_5] : memref<8x1xf32, #tpu.memory_space<vmem>>, vector<8x1xf32>
    %5 = vector.broadcast %4 : vector<8x1xf32> to vector<8x16xf32>
    %6 = arith.addf %3, %5 : vector<8x16xf32>
    %c0_6 = arith.constant 0 : index
    %c0_7 = arith.constant 0 : index
    %c0_8 = arith.constant 0 : index
    %7 = vector.load %arg5[%c0_6, %c0_7, %c0_8] : memref<1x8x16xf32, #tpu.memory_space<vmem>>, vector<1x8x16xf32>
    %8 = vector.shape_cast %7 : vector<1x8x16xf32> to vector<8x16xf32>
    %9 = vector.shape_cast %6 : vector<8x16xf32> to vector<1x8x16xf32>
    tpu.vector_store %arg5[%c0_6, %c0_7, %c0_8], %9 {strides = array<i32>} : memref<1x8x16xf32, #tpu.memory_space<vmem>>, vector<1x8x16xf32>,
    return
  }
  func.func @transform_0(%arg0: i32, %arg1: i32) -> (i32, i32, i32) {
    %c0_i32 = arith.constant 0 : i32
    %c0_i32_0 = arith.constant 0 : i32
    return %arg0, %c0_i32, %arg1 : i32, i32, i32
  }
  func.func @transform_1(%arg0: i32, %arg1: i32) -> (i32, i32) {
    %c0_i32 = arith.constant 0 : i32
    %c0_i32_0 = arith.constant 0 : i32
    %c0_i32_1 = arith.constant 0 : i32
    return %c0_i32, %c0_i32_0 : i32, i32
  }
  func.func @transform_2(%arg0: i32, %arg1: i32) -> (i32, i32) {
    %c0_i32 = arith.constant 0 : i32
    %c0_i32_0 = arith.constant 0 : i32
    %c0_i32_1 = arith.constant 0 : i32
    return %c0_i32, %c0_i32_0 : i32, i32
  }
  func.func @transform_3(%arg0: i32, %arg1: i32) -> (i32, i32, i32) {
    %c0_i32 = arith.constant 0 : i32
    %c0_i32_0 = arith.constant 0 : i32
    return %arg0, %c0_i32, %arg1 : i32, i32, i32
  }
}

</mosaic_0001>

<bundles_post_ra>
// kernel: pointwise_conv.1
= control target key start
LH: loop header
LB: loop body
LE: loop exit
PB: predicated region body
PF: predicated region fallthrough
CT: control target
= control target key end

     0   :  { %8 = vsyncpa [#allocation3], 0  ;;  %s591_s0 = inlined_call_operand.vmem [shape: f32[2,4,16], index: 0, kind: input, shape index: {}]   ;;  %s592_s1 = inlined_call_operand.vmem [shape: f32[8,4], index: 1, kind: input, shape index: {}]   ;;  %s593_s2 = inlined_call_operand.vmem [shape: f32[8,1], index: 2, kind: input, shape index: {}]   ;;  %s594_s3 = inlined_call_operand.hbm [shape: f32[2,8,16], index: 3, kind: output, shape index: {}]  }
   0x1   :  { %10 = vsyncpa [#allocation3 + $0x1], 0  ;;  %s488_s12 = smov 0   ;;  %s490_s13 = smov 0  }
   0x2   :  { %s492_s14 = smov 0   ;;  %s494_s15 = smov 0  }
   0x3   :  { %s496_s16 = smov 0   ;;  %s498_s17 = smov 0  }
   0x4 LB: > { %s317_s18 = sadd.s32 4294967295, %s465_s17   ;;  %s318_s19 = sadd.s32 4294967294, %s465_s17   ;;  %s465_s17 = sphi %s498_s17, %s16_s17   ;;  %s461_s16 = sphi %s496_s16, %s601_s16   ;;  %s457_s15 = sphi %s494_s15, %s600_s15   ;;  %s453_s14 = sphi %s492_s14, %s599_s14   ;;  %s449_s13 = sphi %s490_s13, %s598_s13   ;;  %s445_s12 = sphi %s488_s12, %s597_s12  }
   0x5   : > { %s28_s20 = sadd.s32 1, %s461_s16  ;;  %s107_s21 = sadd.s32 1, %s453_s14 }
   0x6   : > { %p30_p0 = scmp.ge.s32.totalorder %s28_s20, 2  ;;  %p117_p1 = scmp.ne.s32.totalorder %s453_s14, %s449_s13 }
   0x7   : > { %p118_p2 = scmp.eq.s32.totalorder %s317_s18, 1  ;;  %p123_p3 = scmp.ne.s32.totalorder %s449_s13, %s445_s12 }
   0x8   : > { %s603_s20 = smov (%p30_p0, %s28_s20), 0  ;;  %p124_p5 = scmp.eq.s32.totalorder %s318_s19, 1 }
   0x9   : > { %p528_p4 = por %p118_p2, %p117_p1  ;;  %s102_s23 = ssub.s32 %s461_s16, %s603_s20 }
   0xa   : > { %p321_p6 = scmp.ge.s32.totalorder %s465_s17, 1  ;;  %p105_p7 = scmp.eq.s32.totalorder %s102_s23, 0 }
   0xb   : > { %p535_p8 = por %p124_p5, %p123_p3  ;;  %p158_p9 = scmp.lt.s32.totalorder %s465_s17, 3 }
   0xc   : > { %s541_s25 = scalar_select %p105_p7, %s453_s14, %s107_s21  }
   0xd   : > { %p159_p10 = pnand %p321_p6, %p158_p9 }
   0xe   : > { %p184_p11 = scmp.lt.s32.totalorder (!%p159_p10), %s457_s15, 1  ;;  %s181_s8 = sand.u32 (!%p159_p10), 1, %s449_s13  }
   0xf   : > { %162 = sbr.rel (%p159_p10) target bundleno = 157 (0x9d), region = 32  ;;  %s322_s9 = sshll.u32 (!%p159_p10), %s181_s8, 3 }
  0x10   : > { %s327_s10 = sshll.u32 (!%p159_p10), %s457_s15, 3  ;;  %s183_s21 = scalar_lea.vmem (!%p159_p10), [#allocation2], %s322_s9 }
  0x11   : > { %s241_s19 = scalar_lea.hbm (!%p159_p10), %s594_s3, %s327_s10  ;;  %s243_s23 = sshll.u32 (!%p159_p10), %s183_s21, 4  ;;  %s244_s23 = int_to_ptr.vmem [resolvable:$true] %s243_s23 }
  0x12   : > { %s245_s26 = sshll.u32 (!%p159_p10), %s241_s19, 4  ;;  %s230_s27 = scalar_lea.sflag (!%p159_p10), [#allocation3], %s181_s8  ;;  %s246_s26 = int_to_ptr.hbm [resolvable:$true] %s245_s26 }
  0x13   : > { %s407_s4 = scalar_lea.hbm (!%p159_p10), %s594_s3, 16 }
  0x14   : > { %v193_v0 = vld [vmem:[%s593_s2] sm:$0xff]  ;;  %v467_v1 = vmov 0   ;;  %s185_s28 = scalar_select %p184_p11, %s457_s15, 1  ;;  %vm203_vm0 = vcmask 1043456   ;;  %vm199_vm1 = vcmask 31744   ;;  %vm227_vm2 = vcmask 130048  }
  0x15   : > { %386 = vset.pattern.permute.xlu0 %v467_v1  ;;  %v191_v2 = vld [vmem:[%s592_s1] sm:$0xff] }
  0x16   : > { %196 = vperm.xlu0 %386, %v193_v0   ;;  %s323_s29 = sshll.u32 %s185_s28, 2  ;;  %s401_s28 = sshra.s32 %s246_s26, 4  ;;  %s402_s28 = int_to_ptr.hbm [resolvable:$true] %s401_s28 }
  0x17   : > { %s190_s5 = scalar_lea.vmem %s591_s0, %s323_s29  ;;  %s403_s29 = scalar_lea.hbm %s402_s28, 8 }
  0x18   : > { %v192_v3 = vld [vmem:[%s190_s5] sm:$0xf]  ;;  %p404_p12 = scmp.ne.s32.totalorder %s402_s28, %s403_s29  ;;  %p408_p1 = scmp.lt.s32.totalorder %s402_s28, %s594_s3 }
  0x19   : > { %324 = vmatpush.msk.msra.mxu0 %vm203_vm0, %v192_v3  ;;  %p409_p2 = scmp.lt.s32.totalorder %s407_s4, %s403_s29 }
  0x1a   : > { %325 = vmatmul.msk.f32.vlgmr.msra.gmra.mxu0 %vm199_vm1, %v191_v2  ;;  %p405_p13 = pnand %p404_p12, %p528_p4 }
  0x1b   : > { %p410_p3 = por %p409_p2, %p408_p1 }
  0x1c   : > { %p406_p0 = pneg %p405_p13 }
  0x1e   : > { %p411_p5 = pnand %p410_p3, %p406_p0 }
  0x88   : > { %v197_v4 = vpop.permute.xlu0 %196 }
  0x97   : > { %v224_v5 = vpop.f32.mrf.mxu0 }
  0x98   : > { %v225_v6 = vadd.f32 %v224_v5, %v197_v4 }
  0x9a   : > { %228 = vst.msk [vmem:[%s183_s21] sm:$0xff] %vm227_vm2, %v225_v6 }
  0x9b   : > { %414 = shalt.err (!%p411_p5)
}
  0x9c   : > { %330 = dma.vmem_to_hbm [thread:$0]  (%p528_p4), %s244_s23, 128, %s246_s26, %s230_s27  }
  0x9d PF: > { %p336_p6 = scmp.ge.s32.totalorder %s465_s17, 2  ;;  %s257_s7 = sand.u32 1, %s445_s12  }
  0x9e   : > { %s258_s8 = scalar_lea.sflag [#allocation3], %s257_s7 }
  0x9f   : > { %p333_p7 = pnand %p336_p6, %p535_p8 }
  0xa1   : > { %p334_p9 = pneg %p333_p7 }
  0xa3   : > { %440 = dma.done.wait (%p334_p9), %s258_s8, 128  }
  0xa4   : > { %442 = vsyncadd (%p334_p9), %s258_s8, 4294967168  ;;  %s16_s17 = sadd.s32 1, %s465_s17   ;;  %s597_s12 = smov %s449_s13 }
  0xa5   : > { %p13_p10 = scmp.ge.s32.totalorder %s16_s17, 4   ;;  %s598_s13 = smov %s453_s14 }
  0xa6   : > { %s599_s14 = smov %s541_s25  ;;  %s600_s15 = smov %s461_s16 }
  0xa7   : > { %s601_s16 = smov %s603_s20  ;;  %15 = sbr.rel (!%p13_p10) target bundleno = 4 (0x4), region = 67 }
  0xac   :  { %264 = vsyncpa [#allocation3], 1 }
  0xad   :  { %266 = vsyncpa [#allocation3 + $0x1], 1 }

</bundles_post_ra>
